<compile_context>
chip_gen: v6e
topology: v6e:2x2x1
jax: 0.10.0
libtpu: 0.0.40
codegen_flags: <defaults>
</compile_context>

<pallas_src>
import functools

import jax
import jax.numpy as jnp
from jax.experimental import pallas as pl
from jax.experimental.pallas import tpu as pltpu

LANES = 128                     # lane width of the dense (rows, 128) view
SAMPLES_PER_ROW = LANES // 2    # 64 sample-pairs packed per dense row
_MIN_KERNEL_ROWS = 262_144      # below this XLA's fused abs-diff-reduce wins


def _device_defaults():
    """(tile_r, num_slices) tuned per TPU generation."""
    try:
        kind = jax.devices()[0].device_kind.lower()
    except Exception:
        kind = ""
    if "v7" in kind:
        # 8 MiB blocks (16 MiB double-buffered per TC), one slice per TensorCore.
        return 16384, 2
    if "v5" in kind:
        # 2 MiB blocks: 4 MiB double-buffered, inside v5e's 16 MiB scoped VMEM.
        return 4096, 1
    # v6e and anything else: 4 MiB blocks, single TensorCore.
    return 8192, 1


_TILE_R, _NUM_SLICES = _device_defaults()


def _pair_absdiff_sum_kernel(x_ref, o_ref):
    """Fold sum over |even lane - adjacent odd lane| into a resident (8,128) block.

    Mask-free hot path (load -> roll -> |a-b| -> fold): the wrapper only feeds
    whole (tile_r, 128) blocks, and the even-lane selection happens once on the
    tiny partials array outside the kernel.
    """
    @pl.when(pl.program_id(1) == 0)
    def _():
        o_ref[...] = jnp.zeros_like(o_ref)

    x = x_ref[...].astype(jnp.float32)                  # (tile_r, 128)
    partner = pltpu.roll(x, shift=LANES - 1, axis=1)    # lane k <- lane k+1 (XLU)
    d = jnp.abs(x - partner)                            # valid on even lanes
    # Sublane-tile fold: last two dims already match the native (8,128) vreg
    # tile, so this lowers to a tree of VPU adds (no relayout).
    o_ref[...] += d.reshape(-1, 8, LANES).sum(axis=0)


def _reference(x):
    """Pure-JAX reference (also the small-N fast path and tail epilogue base)."""
    n, cols = x.shape
    m = cols - 1
    d = jnp.abs(x[:, 0].astype(jnp.float32) - x[:, 1].astype(jnp.float32))
    return jnp.float32(m) - jnp.sum(d) / n


@functools.partial(jax.jit, static_argnames=("tile_r", "num_slices"))
def class_loss_2class(x, *, tile_r=None, num_slices=None):
    """x: (N, 2) class scores. Returns scalar f32 loss matching the torch module."""
    n, cols = x.shape
    assert cols == 2, "class_loss_2class expects 2 class columns"
    m = cols - 1

    use_defaults = tile_r is None and num_slices is None
    if tile_r is None:
        tile_r = _TILE_R
    if num_slices is None:
        num_slices = _NUM_SLICES
    assert tile_r % 8 == 0

    # Small-N fast path: kernel launch + pipeline prologue cost more than the work.
    if use_defaults and n < _MIN_KERNEL_ROWS:
        return _reference(x)

    samples_per_block = tile_r * SAMPLES_PER_ROW
    tiles_per_slice = n // (num_slices * samples_per_block)
    if tiles_per_slice == 0:
        return _reference(x)

    # Whole-block main region: no ragged blocks, no clamped duplicates,
    # zero in-kernel masking.  The remainder is summed in plain JAX.
    n_main = num_slices * tiles_per_slice * samples_per_block
    r_total = (n_main * 2) // LANES          # = num_slices * tiles_per_slice * tile_r

    if n_main == n:
        tail_sum = jnp.float32(0.0)
    else:
        tail = x[n_main:].astype(jnp.float32)
        tail_sum = jnp.sum(jnp.abs(tail[:, 0] - tail[:, 1]))

    # Free reshape: contiguous (n_main, 2) -> lane-dense (r_total, 128).
    xv = x[:n_main].reshape(r_total, LANES)

    partials = pl.pallas_call(
        _pair_absdiff_sum_kernel,
        out_shape=jax.ShapeDtypeStruct((num_slices * 8, LANES), jnp.float32),
        grid_spec=pltpu.PrefetchScalarGridSpec(
            num_scalar_prefetch=0,
            grid=(num_slices, tiles_per_slice),
            in_specs=[
                pl.BlockSpec(
                    (tile_r, LANES),
                    lambda c, t, tps=tiles_per_slice: (c * tps + t, 0),
                )
            ],
            out_specs=pl.BlockSpec((8, LANES), lambda c, t: (c, 0)),
        ),
        compiler_params=pltpu.CompilerParams(
            dimension_semantics=("parallel", "arbitrary"),
        ),
    )(xv)

    # Even lanes hold the real |class0 - class1| bins; odd lanes hold garbage
    # (but finite) pair-differences and are dropped by the slice (not a mask
    # multiply, so nothing can leak).  Single final cross-lane reduction.
    pair_sum = jnp.sum(partials[:, 0::2]) + tail_sum
    return jnp.float32(m) - pair_sum / n


if __name__ == "__main__":
    key = jax.random.PRNGKey(0)

    def check(x, **kw):
        got = jax.block_until_ready(class_loss_2class(x, **kw))
        want = jax.block_until_ready(_reference(x))
        assert jnp.allclose(got, want, rtol=1e-5, atol=1e-5), (x.shape, kw, got, want)

    # Small-shape kernel exercise: tiny tile_r override -> grid (2 slices x 2
    # tiles x 512 rows) plus a ragged plain-JAX tail of 333 samples.
    key, sub = jax.random.split(key)
    n_small = 2 * 2 * 512 * SAMPLES_PER_ROW + 333
    check(jax.random.uniform(sub, (n_small, 2), dtype=jnp.float32),
          tile_r=512, num_slices=2)

    # Device-default configuration: exactly one full block per slice, no tail.
    key, sub = jax.random.split(key)
    n_one = _NUM_SLICES * _TILE_R * SAMPLES_PER_ROW
    check(jax.random.uniform(sub, (n_one, 2), dtype=jnp.float32))

    # Tiny input: pure-JAX fast path.
    key, sub = jax.random.split(key)
    check(jax.random.uniform(sub, (8, 2), dtype=jnp.float32))

    print("KERNEL_OK")
</pallas_src>

<mosaic_0001>
module attributes {stable_mosaic.version = 11 : i64} {
  func.func @_pair_absdiff_sum_kernel(%arg0: i32, %arg1: i32, %arg2: memref<512x128xf32, #tpu.memory_space<vmem>>, %arg3: memref<8x128xf32, #tpu.memory_space<vmem>>) attributes {dimension_semantics = [#tpu.dimension_semantics<parallel>, #tpu.dimension_semantics<arbitrary>], iteration_bounds = array<i64: 2, 2>, scalar_prefetch = 0 : i64, scratch_operands = 0 : i64, tpu.core_type = #tpu.core_type<tc>, window_params = [{transform_indices = @transform_0, window_bounds = array<i64: 512, 128>}, {transform_indices = @transform_1, window_bounds = array<i64: 8, 128>}]} {
    %c0_i32 = arith.constant 0 : i32
    %0 = arith.cmpi eq, %arg1, %c0_i32 : i32
    %1 = arith.extui %0 : i1 to i32
    %c0_i32_0 = arith.constant 0 : i32
    %2 = arith.cmpi ne, %1, %c0_i32_0 : i32
    scf.if %2 {
      %cst_6 = arith.constant 0.000000e+00 : f32
      %12 = vector.broadcast %cst_6 : f32 to vector<8x128xf32>
      %c0_7 = arith.constant 0 : index
      %c0_8 = arith.constant 0 : index
      %13 = vector.load %arg3[%c0_7, %c0_8] : memref<8x128xf32, #tpu.memory_space<vmem>>, vector<8x128xf32>
      tpu.vector_store %arg3[%c0_7, %c0_8], %12 {strides = array<i32>} : memref<8x128xf32, #tpu.memory_space<vmem>>, vector<8x128xf32>,
    } else {
    }
    %c0 = arith.constant 0 : index
    %c0_1 = arith.constant 0 : index
    %3 = vector.load %arg2[%c0, %c0_1] : memref<512x128xf32, #tpu.memory_space<vmem>>, vector<512x128xf32>
    %c127_i32 = arith.constant 127 : i32
    %4 = tpu.dynamic_rotate %3 by %c127_i32 dim 1 : vector<512x128xf32>, i32 -> vector<512x128xf32>
    %5 = arith.subf %3, %4 : vector<512x128xf32>
    %6 = math.absf %5 : vector<512x128xf32>
    %c0_2 = arith.constant 0 : index
    %c0_3 = arith.constant 0 : index
    %7 = vector.load %arg3[%c0_2, %c0_3] : memref<8x128xf32, #tpu.memory_space<vmem>>, vector<8x128xf32>
    %8 = vector.shape_cast %6 : vector<512x128xf32> to vector<64x8x128xf32>
    %cst = arith.constant dense<0.000000e+00> : vector<8x128xf32>
    %9 = vector.multi_reduction <add>, %8, %cst [0] : vector<64x8x128xf32> to vector<8x128xf32>
    %10 = arith.addf %7, %9 : vector<8x128xf32>
    %c0_4 = arith.constant 0 : index
    %c0_5 = arith.constant 0 : index
    %11 = vector.load %arg3[%c0_4, %c0_5] : memref<8x128xf32, #tpu.memory_space<vmem>>, vector<8x128xf32>
    tpu.vector_store %arg3[%c0_4, %c0_5], %10 {strides = array<i32>} : memref<8x128xf32, #tpu.memory_space<vmem>>, vector<8x128xf32>,
    return
  }
  func.func @transform_0(%arg0: i32, %arg1: i32) -> (i32, i32) {
    %c2_i32 = arith.constant 2 : i32
    %0 = arith.muli %arg0, %c2_i32 : i32
    %1 = arith.addi %0, %arg1 : i32
    %c0_i32 = arith.constant 0 : i32
    %c0_i32_0 = arith.constant 0 : i32
    return %1, %c0_i32 : i32, i32
  }
  func.func @transform_1(%arg0: i32, %arg1: i32) -> (i32, i32) {
    %c0_i32 = arith.constant 0 : i32
    %c0_i32_0 = arith.constant 0 : i32
    return %arg0, %c0_i32 : i32, i32
  }
}

</mosaic_0001>

<bundles_post_ra>
// kernel: class_loss_2class.1
= control target key start
LH: loop header
LB: loop body
LE: loop exit
PB: predicated region body
PF: predicated region fallthrough
CT: control target
= control target key end

     0   :  { %s706_s6 = smov 0   ;;  %s708_s7 = smov 0   ;;  %s1148_s0 = inlined_call_operand.vmem [shape: f32[2048,128], index: 0, kind: input, shape index: {}]   ;;  %s1149_s1 = inlined_call_operand.vmem [shape: f32[16,128], index: 1, kind: output, shape index: {}]  }
   0x1   :  { %s710_s8 = smov 0   ;;  %s712_s9 = smov 0  }
   0x2   :  { %s714_s10 = smov 0  }
   0x3 LB: > { %s20_s11 = sadd.s32 1, %s684_s8  ;;  %s23_s12 = sadd.s32 1, %s688_s9  ;;  %s692_s10 = sphi %s714_s10, %s11_s10   ;;  %s688_s9 = sphi %s712_s9, %s1201_s9   ;;  %s684_s8 = sphi %s710_s8, %s1200_s8   ;;  %s680_s7 = sphi %s708_s7, %s1199_s7   ;;  %s676_s6 = sphi %s706_s6, %s1198_s6  }
   0x4   : > { %p21_p0 = scmp.ge.s32.totalorder %s20_s11, 2  ;;  %p604_p1 = scmp.ge.s32.totalorder %s692_s10, 1 }
   0x5   : > { %p108_p2 = scmp.lt.s32.totalorder %s692_s10, 5 }
   0x6   : > { %s1203_s11 = smov (%p21_p0, %s20_s11), 0  ;;  %s1205_s12 = smov (!%p21_p0, %s23_s12), %s688_s9 }
   0x7   : > { %p109_p3 = pnand %p604_p1, %p108_p2  ;;  %p25_p4 = scmp.ge.s32.totalorder %s1205_s12, 2 }
   0x9   : > { %s1207_s12 = smov (%p25_p4, %s1205_s12), 0  ;;  %112 = sbr.rel (%p109_p3) target bundleno = 278 (0x116), region = 24 }
   0xe   : > { %s605_s13 = sshll.u32 %s680_s7, 1  ;;  %p139_p5 = scmp.lt.s32.totalorder %s680_s7, 1 }
   0xf   : > { %s130_s14 = sadd.s32 %s676_s6, %s605_s13  ;;  %p609_p7 = scmp.ne.s32.totalorder %s676_s6, 0 }
  0x10   : > { %s606_s15 = sshll.u32 %s130_s14, 6  ;;  %s1209_s7 = smov (!%p139_p5, %s680_s7), 1 }
  0x11   : > { %p132_p6 = scmp.lt.s32.totalorder %s606_s15, 255  ;;  %s608_s16 = sshll.u32 %s1209_s7, 3 }
  0x12   : > { %s739_s20 = scalar_lea.vmem %s1149_s1, %s608_s16  ;;  %146 = sbr.rel (%p609_p7) target bundleno = 25 (0x19), region = 28 }
  0x13   : > { %s1211_s15 = smov (!%p132_p6, %s606_s15), 255 }
  0x14   : > { %s607_s17 = sshll.u32 %s1211_s15, 3 }
  0x15   : > { %s744_s23 = scalar_lea.vmem %s1148_s0, %s607_s17 }
  0x17   : > { %v694_v0 = vmov 0.0  }
  0x18   : > { %147 = vst [vmem:[%s739_s20] sm:$0xff] %v694_v0 }
  0x19 PF: > { %v748_v1 = vld [vmem:[%s744_s23] sm:$0xff]  ;;  %v751_v2 = vld [vmem:[%s744_s23 + $0x10] sm:$0xff]  ;;  %s695_s24 = smov 127   ;;  %v758_v3 = vld [vmem:[%s744_s23 + $0x8] sm:$0xff] }
  0x1a   : > { %212 = vrot.lane.b32.xlu0 %v748_v1, %s695_s24  ;;  %216 = vrot.lane.b32.xlu1 %v751_v2, %s695_s24  ;;  %v761_v4 = vld [vmem:[%s744_s23 + $0x18] sm:$0xff]  ;;  %v768_v5 = vld [vmem:[%s744_s23 + $0x20] sm:$0xff] }
  0x1b   : > { %v771_v6 = vld [vmem:[%s744_s23 + $0x28] sm:$0xff]  ;;  %v778_v7 = vld [vmem:[%s744_s23 + $0x30] sm:$0xff]  ;;  %v781_v8 = vld [vmem:[%s744_s23 + $0x38] sm:$0xff] }
  0x1c   : > { %v788_v9 = vld [vmem:[%s744_s23 + $0x40] sm:$0xff]  ;;  %v791_v10 = vld [vmem:[%s744_s23 + $0x48] sm:$0xff]  ;;  %v798_v11 = vld [vmem:[%s744_s23 + $0x50] sm:$0xff] }
  0x1d   : > { %v801_v12 = vld [vmem:[%s744_s23 + $0x58] sm:$0xff]  ;;  %v808_v13 = vld [vmem:[%s744_s23 + $0x60] sm:$0xff]  ;;  %v811_v14 = vld [vmem:[%s744_s23 + $0x68] sm:$0xff] }
  0x1e   : > { %214 = vrot.lane.b32.xlu0 %v758_v3, %s695_s24  ;;  %218 = vrot.lane.b32.xlu1 %v761_v4, %s695_s24  ;;  %v818_v15 = vld [vmem:[%s744_s23 + $0x70] sm:$0xff]  ;;  %v821_v16 = vld [vmem:[%s744_s23 + $0x78] sm:$0xff] }
  0x1f   : > { %v828_v17 = vld [vmem:[%s744_s23 + $0x80] sm:$0xff]  ;;  %v831_v18 = vld [vmem:[%s744_s23 + $0x88] sm:$0xff]  ;;  %v838_v19 = vld [vmem:[%s744_s23 + $0x90] sm:$0xff] }
  0x20   : > { %v841_v20 = vld [vmem:[%s744_s23 + $0x98] sm:$0xff]  ;;  %v848_v21 = vld [vmem:[%s744_s23 + $0xa0] sm:$0xff]  ;;  %v851_v22 = vld [vmem:[%s744_s23 + $0xa8] sm:$0xff] }
  0x21   : > { %v858_v23 = vld [vmem:[%s744_s23 + $0xb0] sm:$0xff]  ;;  %v861_v24 = vld [vmem:[%s744_s23 + $0xb8] sm:$0xff]  ;;  %v868_v25 = vld [vmem:[%s744_s23 + $0xc0] sm:$0xff] }
  0x22   : > { %220 = vrot.lane.b32.xlu0 %v768_v5, %s695_s24  ;;  %222 = vrot.lane.b32.xlu1 %v771_v6, %s695_s24  ;;  %v871_v26 = vld [vmem:[%s744_s23 + $0xc8] sm:$0xff]  ;;  %v878_v27 = vld [vmem:[%s744_s23 + $0xd0] sm:$0xff] }
  0x23   : > { %v881_v28 = vld [vmem:[%s744_s23 + $0xd8] sm:$0xff]  ;;  %v888_v29 = vld [vmem:[%s744_s23 + $0xe0] sm:$0xff]  ;;  %v891_v30 = vld [vmem:[%s744_s23 + $0xe8] sm:$0xff] }
  0x24   : > { %v898_v31 = vld [vmem:[%s744_s23 + $0xf0] sm:$0xff]  ;;  %v901_v32 = vld [vmem:[%s744_s23 + $0xf8] sm:$0xff]  ;;  %v908_v33 = vld [vmem:[%s744_s23 + $0x100] sm:$0xff] }
  0x25   : > { %v911_v34 = vld [vmem:[%s744_s23 + $0x108] sm:$0xff]  ;;  %v918_v35 = vld [vmem:[%s744_s23 + $0x110] sm:$0xff]  ;;  %v921_v36 = vld [vmem:[%s744_s23 + $0x118] sm:$0xff] }
  0x26   : > { %224 = vrot.lane.b32.xlu0 %v778_v7, %s695_s24  ;;  %226 = vrot.lane.b32.xlu1 %v781_v8, %s695_s24  ;;  %v928_v37 = vld [vmem:[%s744_s23 + $0x120] sm:$0xff]  ;;  %v931_v38 = vld [vmem:[%s744_s23 + $0x128] sm:$0xff] }
  0x27   : > { %v938_v39 = vld [vmem:[%s744_s23 + $0x130] sm:$0xff]  ;;  %v941_v40 = vld [vmem:[%s744_s23 + $0x138] sm:$0xff]  ;;  %v948_v41 = vld [vmem:[%s744_s23 + $0x140] sm:$0xff] }
  0x28   : > { %v951_v42 = vld [vmem:[%s744_s23 + $0x148] sm:$0xff]  ;;  %v958_v43 = vld [vmem:[%s744_s23 + $0x150] sm:$0xff]  ;;  %v961_v44 = vld [vmem:[%s744_s23 + $0x158] sm:$0xff] }
  0x29   : > { %v968_v45 = vld [vmem:[%s744_s23 + $0x160] sm:$0xff]  ;;  %v971_v46 = vld [vmem:[%s744_s23 + $0x168] sm:$0xff]  ;;  %v978_v47 = vld [vmem:[%s744_s23 + $0x170] sm:$0xff] }
  0x2a   : > { %228 = vrot.lane.b32.xlu0 %v788_v9, %s695_s24  ;;  %230 = vrot.lane.b32.xlu1 %v791_v10, %s695_s24  ;;  %v981_v48 = vld [vmem:[%s744_s23 + $0x178] sm:$0xff]  ;;  %v988_v49 = vld [vmem:[%s744_s23 + $0x180] sm:$0xff] }
  0x2b   : > { %1166 = vst [vmem:[#allocation2_spill] sm:$0xff] %v988_v49  ;;  %v991_v50 = vld [vmem:[%s744_s23 + $0x188] sm:$0xff]  ;;  %v998_v51 = vld [vmem:[%s744_s23 + $0x190] sm:$0xff]  ;;  %v1001_v52 = vld [vmem:[%s744_s23 + $0x198] sm:$0xff] }
  0x2c   : > { %1167 = vst [vmem:[#allocation3_spill] sm:$0xff] %v991_v50  ;;  %1168 = vst [vmem:[#allocation4_spill] sm:$0xff] %v998_v51  ;;  %v1008_v53 = vld [vmem:[%s744_s23 + $0x1a0] sm:$0xff]  ;;  %v1011_v54 = vld [vmem:[%s744_s23 + $0x1a8] sm:$0xff] }
  0x2d   : > { %1169 = vst [vmem:[#allocation5_spill] sm:$0xff] %v1001_v52  ;;  %1170 = vst [vmem:[#allocation6_spill] sm:$0xff] %v1008_v53  ;;  %v1018_v55 = vld [vmem:[%s744_s23 + $0x1b0] sm:$0xff]  ;;  %v1021_v56 = vld [vmem:[%s744_s23 + $0x1b8] sm:$0xff] }
  0x2e   : > { %232 = vrot.lane.b32.xlu0 %v798_v11, %s695_s24  ;;  %234 = vrot.lane.b32.xlu1 %v801_v12, %s695_s24  ;;  %1171 = vst [vmem:[#allocation7_spill] sm:$0xff] %v1011_v54  ;;  %1172 = vst [vmem:[#allocation8_spill] sm:$0xff] %v1018_v55  ;;  %v1028_v57 = vld [vmem:[%s744_s23 + $0x1c0] sm:$0xff]  ;;  %v1031_v58 = vld [vmem:[%s744_s23 + $0x1c8] sm:$0xff] }
  0x2f   : > { %1173 = vst [vmem:[#allocation9_spill] sm:$0xff] %v1021_v56  ;;  %1174 = vst [vmem:[#allocation10_spill] sm:$0xff] %v1028_v57  ;;  %v1038_v59 = vld [vmem:[%s744_s23 + $0x1d0] sm:$0xff]  ;;  %v1041_v60 = vld [vmem:[%s744_s23 + $0x1d8] sm:$0xff] }
  0x30   : > { %1175 = vst [vmem:[#allocation11_spill] sm:$0xff] %v1031_v58  ;;  %1176 = vst [vmem:[#allocation12_spill] sm:$0xff] %v1038_v59  ;;  %v1049_v0 = vld [vmem:[%s744_s23 + $0x1e0] sm:$0xff] }
  0x31   : > { %1177 = vst [vmem:[#allocation13_spill] sm:$0xff] %v1041_v60  ;;  %1178 = vst [vmem:[#allocation14_spill] sm:$0xff] %v1049_v0 }
  0x32   : > { %236 = vrot.lane.b32.xlu0 %v808_v13, %s695_s24  ;;  %238 = vrot.lane.b32.xlu1 %v811_v14, %s695_s24 }
  0x36   : > { %240 = vrot.lane.b32.xlu0 %v818_v15, %s695_s24  ;;  %242 = vrot.lane.b32.xlu1 %v821_v16, %s695_s24 }
  0x3a   : > { %244 = vrot.lane.b32.xlu0 %v828_v17, %s695_s24  ;;  %246 = vrot.lane.b32.xlu1 %v831_v18, %s695_s24 }
  0x3e   : > { %248 = vrot.lane.b32.xlu0 %v838_v19, %s695_s24  ;;  %250 = vrot.lane.b32.xlu1 %v841_v20, %s695_s24 }
  0x42   : > { %252 = vrot.lane.b32.xlu0 %v848_v21, %s695_s24  ;;  %254 = vrot.lane.b32.xlu1 %v851_v22, %s695_s24 }
  0x46   : > { %256 = vrot.lane.b32.xlu0 %v858_v23, %s695_s24  ;;  %258 = vrot.lane.b32.xlu1 %v861_v24, %s695_s24 }
  0x4a   : > { %260 = vrot.lane.b32.xlu0 %v868_v25, %s695_s24  ;;  %262 = vrot.lane.b32.xlu1 %v871_v26, %s695_s24 }
  0x4e   : > { %264 = vrot.lane.b32.xlu0 %v878_v27, %s695_s24  ;;  %266 = vrot.lane.b32.xlu1 %v881_v28, %s695_s24 }
  0x52   : > { %268 = vrot.lane.b32.xlu0 %v888_v29, %s695_s24  ;;  %270 = vrot.lane.b32.xlu1 %v891_v30, %s695_s24 }
  0x56   : > { %272 = vrot.lane.b32.xlu0 %v898_v31, %s695_s24  ;;  %274 = vrot.lane.b32.xlu1 %v901_v32, %s695_s24 }
  0x5a   : > { %276 = vrot.lane.b32.xlu0 %v908_v33, %s695_s24  ;;  %278 = vrot.lane.b32.xlu1 %v911_v34, %s695_s24 }
  0x5e   : > { %280 = vrot.lane.b32.xlu0 %v918_v35, %s695_s24  ;;  %282 = vrot.lane.b32.xlu1 %v921_v36, %s695_s24 }
  0x62   : > { %284 = vrot.lane.b32.xlu0 %v928_v37, %s695_s24  ;;  %286 = vrot.lane.b32.xlu1 %v931_v38, %s695_s24 }
  0x66   : > { %288 = vrot.lane.b32.xlu0 %v938_v39, %s695_s24  ;;  %290 = vrot.lane.b32.xlu1 %v941_v40, %s695_s24 }
  0x6a   : > { %292 = vrot.lane.b32.xlu0 %v948_v41, %s695_s24  ;;  %294 = vrot.lane.b32.xlu1 %v951_v42, %s695_s24 }
  0x6e   : > { %296 = vrot.lane.b32.xlu0 %v958_v43, %s695_s24  ;;  %298 = vrot.lane.b32.xlu1 %v961_v44, %s695_s24 }
  0x72   : > { %300 = vrot.lane.b32.xlu0 %v968_v45, %s695_s24  ;;  %302 = vrot.lane.b32.xlu1 %v971_v46, %s695_s24 }
  0x76   : > { %304 = vrot.lane.b32.xlu0 %v978_v47, %s695_s24  ;;  %306 = vrot.lane.b32.xlu1 %v981_v48, %s695_s24 }
  0x7a   : > { %308 = vrot.lane.b32.xlu0 %v988_v49, %s695_s24  ;;  %310 = vrot.lane.b32.xlu1 %v991_v50, %s695_s24 }
  0x7e   : > { %312 = vrot.lane.b32.xlu0 %v998_v51, %s695_s24  ;;  %314 = vrot.lane.b32.xlu1 %v1001_v52, %s695_s24 }
  0x82   : > { %316 = vrot.lane.b32.xlu0 %v1008_v53, %s695_s24  ;;  %318 = vrot.lane.b32.xlu1 %v1011_v54, %s695_s24 }
  0x86   : > { %320 = vrot.lane.b32.xlu0 %v1018_v55, %s695_s24  ;;  %322 = vrot.lane.b32.xlu1 %v1021_v56, %s695_s24 }
  0x8a   : > { %324 = vrot.lane.b32.xlu0 %v1028_v57, %s695_s24  ;;  %326 = vrot.lane.b32.xlu1 %v1031_v58, %s695_s24  ;;  %v1052_v57 = vld [vmem:[%s744_s23 + $0x1e8] sm:$0xff] }
  0x8b   : > { %1179 = vst [vmem:[#allocation15_spill] sm:$0xff] %v1052_v57 }
  0x8c   : > { %v213_v61 = vpop.permute.xlu0 %212  ;;  %v217_v62 = vpop.permute.xlu1 %216 }
  0x8d   : > { %v340_v63 = vsub.f32 %v748_v1, %v213_v61  ;;  %v342_v58 = vsub.f32 %v751_v2, %v217_v62  ;;  %v1062_v61 = vld [vmem:[%s744_s23 + $0x1f0] sm:$0xff] }
  0x8e   : > { %328 = vrot.lane.b32.xlu0 %v1038_v59, %s695_s24  ;;  %330 = vrot.lane.b32.xlu1 %v1041_v60, %s695_s24  ;;  %1180 = vst [vmem:[#allocation16_spill] sm:$0xff] %v1062_v61  ;;  %v1065_v59 = vld [vmem:[%s744_s23 + $0x1f8] sm:$0xff] }
  0x8f   : > { %v404_v60 = vand.u32 2147483647, %v340_v63  ;;  %1181 = vst [vmem:[#allocation17_spill] sm:$0xff] %v1065_v59  ;;  %v406_v52 = vand.u32 2147483647, %v342_v58 }
  0x90   : > { %v215_v56 = vpop.permute.xlu0 %214  ;;  %v219_v55 = vpop.permute.xlu1 %218 }
  0x91   : > { %v341_v54 = vsub.f32 %v758_v3, %v215_v56  ;;  %v343_v53 = vsub.f32 %v761_v4, %v219_v55 }
  0x92   : > { %332 = vrot.lane.b32.xlu0 %v1049_v0, %s695_s24  ;;  %334 = vrot.lane.b32.xlu1 %v1052_v57, %s695_s24 }
  0x93   : > { %v405_v1 = vand.u32 2147483647, %v341_v54  ;;  %v407_v50 = vand.u32 2147483647, %v343_v53 }
  0x94   : > { %v221_v2 = vpop.permute.xlu0 %220  ;;  %v223_v62 = vpop.permute.xlu1 %222 }
  0x95   : > { %v469_v51 = vadd.f32 %v405_v1, %v404_v60  ;;  %v344_v3 = vsub.f32 %v768_v5, %v221_v2  ;;  %v345_v4 = vsub.f32 %v771_v6, %v223_v62 }
  0x96   : > { %336 = vrot.lane.b32.xlu0 %v1062_v61, %s695_s24  ;;  %338 = vrot.lane.b32.xlu1 %v1065_v59, %s695_s24 }
  0x97   : > { %v470_v54 = vadd.f32 %v469_v51, %v406_v52  ;;  %v408_v55 = vand.u32 2147483647, %v344_v3  ;;  %v409_v58 = vand.u32 2147483647, %v345_v4 }
  0x98   : > { %v225_v56 = vpop.permute.xlu0 %224  ;;  %v227_v63 = vpop.permute.xlu1 %226 }
  0x99   : > { %v471_v57 = vadd.f32 %v470_v54, %v407_v50  ;;  %v346_v0 = vsub.f32 %v778_v7, %v225_v56  ;;  %v347_v53 = vsub.f32 %v781_v8, %v227_v63 }
  0x9b   : > { %v472_v60 = vadd.f32 %v471_v57, %v408_v55  ;;  %v410_v5 = vand.u32 2147483647, %v346_v0  ;;  %v411_v62 = vand.u32 2147483647, %v347_v53 }
  0x9c   : > { %v229_v1 = vpop.permute.xlu0 %228  ;;  %v231_v6 = vpop.permute.xlu1 %230 }
  0x9d   : > { %v473_v2 = vadd.f32 %v472_v60, %v409_v58  ;;  %v348_v61 = vsub.f32 %v788_v9, %v229_v1  ;;  %v349_v59 = vsub.f32 %v791_v10, %v231_v6 }
  0x9f   : > { %v474_v51 = vadd.f32 %v473_v2, %v410_v5  ;;  %v412_v52 = vand.u32 2147483647, %v348_v61  ;;  %v413_v4 = vand.u32 2147483647, %v349_v59 }
  0xa0   : > { %v233_v3 = vpop.permute.xlu0 %232  ;;  %v235_v49 = vpop.permute.xlu1 %234 }
  0xa1   : > { %v475_v50 = vadd.f32 %v474_v51, %v411_v62  ;;  %v350_v7 = vsub.f32 %v798_v11, %v233_v3  ;;  %v351_v8 = vsub.f32 %v801_v12, %v235_v49 }
  0xa3   : > { %v476_v57 = vadd.f32 %v475_v50, %v412_v52  ;;  %v414_v0 = vand.u32 2147483647, %v350_v7  ;;  %v415_v63 = vand.u32 2147483647, %v351_v8 }
  0xa4   : > { %v237_v54 = vpop.permute.xlu0 %236  ;;  %v239_v55 = vpop.permute.xlu1 %238 }
  0xa5   : > { %v477_v56 = vadd.f32 %v476_v57, %v413_v4  ;;  %v352_v9 = vsub.f32 %v808_v13, %v237_v54  ;;  %v353_v10 = vsub.f32 %v811_v14, %v239_v55 }
  0xa7   : > { %v478_v58 = vadd.f32 %v477_v56, %v414_v0  ;;  %v416_v61 = vand.u32 2147483647, %v352_v9  ;;  %v417_v59 = vand.u32 2147483647, %v353_v10 }
  0xa8   : > { %v241_v53 = vpop.permute.xlu0 %240  ;;  %v243_v60 = vpop.permute.xlu1 %242 }
  0xa9   : > { %v479_v5 = vadd.f32 %v478_v58, %v415_v63  ;;  %v354_v11 = vsub.f32 %v818_v15, %v241_v53  ;;  %v355_v12 = vsub.f32 %v821_v16, %v243_v60 }
  0xab   : > { %v480_v49 = vadd.f32 %v479_v5, %v416_v61  ;;  %v418_v1 = vand.u32 2147483647, %v354_v11  ;;  %v419_v51 = vand.u32 2147483647, %v355_v12 }
  0xac   : > { %v245_v6 = vpop.permute.xlu0 %244  ;;  %v247_v2 = vpop.permute.xlu1 %246 }
  0xad   : > { %v481_v62 = vadd.f32 %v480_v49, %v417_v59  ;;  %v356_v13 = vsub.f32 %v828_v17, %v245_v6  ;;  %v357_v14 = vsub.f32 %v831_v18, %v247_v2 }
  0xaf   : > { %v482_v52 = vadd.f32 %v481_v62, %v418_v1  ;;  %v420_v3 = vand.u32 2147483647, %v356_v13  ;;  %v421_v8 = vand.u32 2147483647, %v357_v14 }
  0xb0   : > { %v249_v50 = vpop.permute.xlu0 %248  ;;  %v251_v4 = vpop.permute.xlu1 %250 }
  0xb1   : > { %v483_v7 = vadd.f32 %v482_v52, %v419_v51  ;;  %v358_v15 = vsub.f32 %v838_v19, %v249_v50  ;;  %v359_v16 = vsub.f32 %v841_v20, %v251_v4 }
  0xb3   : > { %v484_v57 = vadd.f32 %v483_v7, %v420_v3  ;;  %v422_v0 = vand.u32 2147483647, %v358_v15  ;;  %v423_v63 = vand.u32 2147483647, %v359_v16 }
  0xb4   : > { %v253_v54 = vpop.permute.xlu0 %252  ;;  %v255_v55 = vpop.permute.xlu1 %254 }
  0xb5   : > { %v485_v56 = vadd.f32 %v484_v57, %v421_v8  ;;  %v360_v17 = vsub.f32 %v848_v21, %v253_v54  ;;  %v361_v18 = vsub.f32 %v851_v22, %v255_v55 }
  0xb7   : > { %v486_v9 = vadd.f32 %v485_v56, %v422_v0  ;;  %v424_v10 = vand.u32 2147483647, %v360_v17  ;;  %v425_v60 = vand.u32 2147483647, %v361_v18 }
  0xb8   : > { %v257_v58 = vpop.permute.xlu0 %256  ;;  %v259_v61 = vpop.permute.xlu1 %258 }
  0xb9   : > { %v487_v53 = vadd.f32 %v486_v9, %v423_v63  ;;  %v362_v19 = vsub.f32 %v858_v23, %v257_v58  ;;  %v363_v20 = vsub.f32 %v861_v24, %v259_v61 }
  0xbb   : > { %v488_v5 = vadd.f32 %v487_v53, %v424_v10  ;;  %v426_v59 = vand.u32 2147483647, %v362_v19  ;;  %v427_v1 = vand.u32 2147483647, %v363_v20 }
  0xbc   : > { %v261_v11 = vpop.permute.xlu0 %260  ;;  %v263_v12 = vpop.permute.xlu1 %262 }
  0xbd   : > { %v489_v49 = vadd.f32 %v488_v5, %v425_v60  ;;  %v364_v21 = vsub.f32 %v868_v25, %v261_v11  ;;  %v365_v22 = vsub.f32 %v871_v26, %v263_v12 }
  0xbf   : > { %v490_v6 = vadd.f32 %v489_v49, %v426_v59  ;;  %v428_v2 = vand.u32 2147483647, %v364_v21  ;;  %v429_v14 = vand.u32 2147483647, %v365_v22 }
  0xc0   : > { %v265_v62 = vpop.permute.xlu0 %264  ;;  %v267_v51 = vpop.permute.xlu1 %266 }
  0xc1   : > { %v491_v13 = vadd.f32 %v490_v6, %v427_v1  ;;  %v366_v23 = vsub.f32 %v878_v27, %v265_v62  ;;  %v367_v24 = vsub.f32 %v881_v28, %v267_v51 }
  0xc3   : > { %v492_v52 = vadd.f32 %v491_v13, %v428_v2  ;;  %v430_v3 = vand.u32 2147483647, %v366_v23  ;;  %v431_v8 = vand.u32 2147483647, %v367_v24 }
  0xc4   : > { %v269_v50 = vpop.permute.xlu0 %268  ;;  %v271_v4 = vpop.permute.xlu1 %270 }
  0xc5   : > { %v493_v7 = vadd.f32 %v492_v52, %v429_v14  ;;  %v368_v25 = vsub.f32 %v888_v29, %v269_v50  ;;  %v369_v26 = vsub.f32 %v891_v30, %v271_v4 }
  0xc7   : > { %v494_v15 = vadd.f32 %v493_v7, %v430_v3  ;;  %v432_v16 = vand.u32 2147483647, %v368_v25  ;;  %v433_v55 = vand.u32 2147483647, %v369_v26 }
  0xc8   : > { %v273_v57 = vpop.permute.xlu0 %272  ;;  %v275_v0 = vpop.permute.xlu1 %274 }
  0xc9   : > { %v495_v54 = vadd.f32 %v494_v15, %v431_v8  ;;  %v370_v27 = vsub.f32 %v898_v31, %v273_v57  ;;  %v371_v28 = vsub.f32 %v901_v32, %v275_v0 }
  0xcb   : > { %v496_v56 = vadd.f32 %v495_v54, %v432_v16  ;;  %v434_v63 = vand.u32 2147483647, %v370_v27  ;;  %v435_v10 = vand.u32 2147483647, %v371_v28 }
  0xcc   : > { %v277_v17 = vpop.permute.xlu0 %276  ;;  %v279_v18 = vpop.permute.xlu1 %278 }
  0xcd   : > { %v497_v9 = vadd.f32 %v496_v56, %v433_v55  ;;  %v372_v29 = vsub.f32 %v908_v33, %v277_v17  ;;  %v373_v30 = vsub.f32 %v911_v34, %v279_v18 }
  0xcf   : > { %v498_v58 = vadd.f32 %v497_v9, %v434_v63  ;;  %v436_v61 = vand.u32 2147483647, %v372_v29  ;;  %v437_v20 = vand.u32 2147483647, %v373_v30 }
  0xd0   : > { %v281_v53 = vpop.permute.xlu0 %280  ;;  %v283_v60 = vpop.permute.xlu1 %282 }
  0xd1   : > { %v499_v19 = vadd.f32 %v498_v58, %v435_v10  ;;  %v374_v31 = vsub.f32 %v918_v35, %v281_v53  ;;  %v375_v32 = vsub.f32 %v921_v36, %v283_v60  ;;  %v1182_v53 = vld [vmem:[#allocation2_spill] sm:$0xff]  ;;  %v1183_v60 = vld [vmem:[#allocation3_spill] sm:$0xff] }
  0xd3   : > { %v500_v5 = vadd.f32 %v499_v19, %v436_v61  ;;  %v438_v59 = vand.u32 2147483647, %v374_v31  ;;  %v439_v1 = vand.u32 2147483647, %v375_v32 }
  0xd4   : > { %v285_v11 = vpop.permute.xlu0 %284  ;;  %v287_v12 = vpop.permute.xlu1 %286 }
  0xd5   : > { %v501_v49 = vadd.f32 %v500_v5, %v437_v20  ;;  %v376_v33 = vsub.f32 %v928_v37, %v285_v11  ;;  %v377_v34 = vsub.f32 %v931_v38, %v287_v12  ;;  %v1184_v11 = vld [vmem:[#allocation4_spill] sm:$0xff]  ;;  %v1185_v12 = vld [vmem:[#allocation5_spill] sm:$0xff] }
  0xd7   : > { %v502_v21 = vadd.f32 %v501_v49, %v438_v59  ;;  %v440_v22 = vand.u32 2147483647, %v376_v33  ;;  %v441_v51 = vand.u32 2147483647, %v377_v34 }
  0xd8   : > { %v289_v6 = vpop.permute.xlu0 %288  ;;  %v291_v2 = vpop.permute.xlu1 %290 }
  0xd9   : > { %v503_v62 = vadd.f32 %v502_v21, %v439_v1  ;;  %v378_v35 = vsub.f32 %v938_v39, %v289_v6  ;;  %v379_v36 = vsub.f32 %v941_v40, %v291_v2  ;;  %v1186_v6 = vld [vmem:[#allocation6_spill] sm:$0xff] }
  0xdb   : > { %v504_v13 = vadd.f32 %v503_v62, %v440_v22  ;;  %v442_v14 = vand.u32 2147483647, %v378_v35  ;;  %v443_v3 = vand.u32 2147483647, %v379_v36  ;;  %v1187_v62 = vld [vmem:[#allocation7_spill] sm:$0xff] }
  0xdc   : > { %v293_v23 = vpop.permute.xlu0 %292  ;;  %v295_v24 = vpop.permute.xlu1 %294 }
  0xdd   : > { %v505_v52 = vadd.f32 %v504_v13, %v441_v51  ;;  %v380_v37 = vsub.f32 %v948_v41, %v293_v23  ;;  %v381_v38 = vsub.f32 %v951_v42, %v295_v24 }
  0xdf   : > { %v506_v50 = vadd.f32 %v505_v52, %v442_v14  ;;  %v444_v4 = vand.u32 2147483647, %v380_v37  ;;  %v445_v26 = vand.u32 2147483647, %v381_v38  ;;  %v1188_v52 = vld [vmem:[#allocation8_spill] sm:$0xff]  ;;  %v1189_v37 = vld [vmem:[#allocation9_spill] sm:$0xff] }
  0xe0   : > { %v297_v7 = vpop.permute.xlu0 %296  ;;  %v299_v8 = vpop.permute.xlu1 %298 }
  0xe1   : > { %v507_v25 = vadd.f32 %v506_v50, %v443_v3  ;;  %v382_v39 = vsub.f32 %v958_v43, %v297_v7  ;;  %v383_v40 = vsub.f32 %v961_v44, %v299_v8 }
  0xe3   : > { %v508_v15 = vadd.f32 %v507_v25, %v444_v4  ;;  %v446_v16 = vand.u32 2147483647, %v382_v39  ;;  %v447_v55 = vand.u32 2147483647, %v383_v40  ;;  %v1190_v39 = vld [vmem:[#allocation10_spill] sm:$0xff] }
  0xe4   : > { %v301_v57 = vpop.permute.xlu0 %300  ;;  %v303_v0 = vpop.permute.xlu1 %302 }
  0xe5   : > { %v509_v54 = vadd.f32 %v508_v15, %v445_v26  ;;  %v384_v41 = vsub.f32 %v968_v45, %v301_v57  ;;  %v385_v42 = vsub.f32 %v971_v46, %v303_v0  ;;  %v1191_v15 = vld [vmem:[#allocation11_spill] sm:$0xff] }
  0xe7   : > { %v510_v27 = vadd.f32 %v509_v54, %v446_v16  ;;  %v448_v28 = vand.u32 2147483647, %v384_v41  ;;  %v449_v18 = vand.u32 2147483647, %v385_v42 }
  0xe8   : > { %v305_v56 = vpop.permute.xlu0 %304  ;;  %v307_v63 = vpop.permute.xlu1 %306 }
  0xe9   : > { %v511_v17 = vadd.f32 %v510_v27, %v447_v55  ;;  %v386_v43 = vsub.f32 %v978_v47, %v305_v56  ;;  %v387_v44 = vsub.f32 %v981_v48, %v307_v63  ;;  %v1192_v27 = vld [vmem:[#allocation12_spill] sm:$0xff]  ;;  %v1193_v56 = vld [vmem:[#allocation13_spill] sm:$0xff] }
  0xeb   : > { %v512_v9 = vadd.f32 %v511_v17, %v448_v28  ;;  %v450_v10 = vand.u32 2147483647, %v386_v43  ;;  %v451_v61 = vand.u32 2147483647, %v387_v44 }
  0xec   : > { %v309_v29 = vpop.permute.xlu0 %308  ;;  %v311_v30 = vpop.permute.xlu1 %310 }
  0xed   : > { %v513_v58 = vadd.f32 %v512_v9, %v449_v18  ;;  %v388_v45 = vsub.f32 %v1182_v53, %v309_v29  ;;  %v389_v46 = vsub.f32 %v1183_v60, %v311_v30  ;;  %v1194_v29 = vld [vmem:[#allocation14_spill] sm:$0xff] }
  0xef   : > { %v514_v19 = vadd.f32 %v513_v58, %v450_v10  ;;  %v452_v20 = vand.u32 2147483647, %v388_v45  ;;  %v453_v59 = vand.u32 2147483647, %v389_v46  ;;  %v1195_v58 = vld [vmem:[#allocation15_spill] sm:$0xff] }
  0xf0   : > { %v313_v31 = vpop.permute.xlu0 %312  ;;  %v315_v32 = vpop.permute.xlu1 %314 }
  0xf1   : > { %v515_v5 = vadd.f32 %v514_v19, %v451_v61  ;;  %v390_v47 = vsub.f32 %v1184_v11, %v313_v31  ;;  %v391_v48 = vsub.f32 %v1185_v12, %v315_v32  ;;  %v1196_v31 = vld [vmem:[#allocation16_spill] sm:$0xff] }
  0xf3   : > { %v516_v49 = vadd.f32 %v515_v5, %v452_v20  ;;  %v454_v1 = vand.u32 2147483647, %v390_v47  ;;  %v455_v22 = vand.u32 2147483647, %v391_v48  ;;  %v1197_v5 = vld [vmem:[#allocation17_spill] sm:$0xff] }
  0xf4   : > { %v317_v33 = vpop.permute.xlu0 %316  ;;  %v319_v34 = vpop.permute.xlu1 %318 }
  0xf5   : > { %v517_v21 = vadd.f32 %v516_v49, %v453_v59  ;;  %v392_v2 = vsub.f32 %v1186_v6, %v317_v33  ;;  %v393_v51 = vsub.f32 %v1187_v62, %v319_v34 }
  0xf7   : > { %v518_v35 = vadd.f32 %v517_v21, %v454_v1  ;;  %v456_v36 = vand.u32 2147483647, %v392_v2  ;;  %v457_v24 = vand.u32 2147483647, %v393_v51  ;;  %v468_v1 = vld [vmem:[%s739_s20] sm:$0xff] }
  0xf8   : > { %v321_v13 = vpop.permute.xlu0 %320  ;;  %v323_v14 = vpop.permute.xlu1 %322 }
  0xf9   : > { %v519_v23 = vadd.f32 %v518_v35, %v455_v22  ;;  %v394_v3 = vsub.f32 %v1188_v52, %v321_v13  ;;  %v395_v38 = vsub.f32 %v1189_v37, %v323_v14 }
  0xfb   : > { %v520_v50 = vadd.f32 %v519_v23, %v456_v36  ;;  %v458_v4 = vand.u32 2147483647, %v394_v3  ;;  %v459_v26 = vand.u32 2147483647, %v395_v38 }
  0xfc   : > { %v325_v7 = vpop.permute.xlu0 %324  ;;  %v327_v8 = vpop.permute.xlu1 %326 }
  0xfd   : > { %v521_v25 = vadd.f32 %v520_v50, %v457_v24  ;;  %v396_v40 = vsub.f32 %v1190_v39, %v325_v7  ;;  %v397_v16 = vsub.f32 %v1191_v15, %v327_v8 }
  0xff   : > { %v522_v57 = vadd.f32 %v521_v25, %v458_v4  ;;  %v460_v0 = vand.u32 2147483647, %v396_v40  ;;  %v461_v42 = vand.u32 2147483647, %v397_v16 }
 0x100   : > { %v329_v54 = vpop.permute.xlu0 %328  ;;  %v331_v55 = vpop.permute.xlu1 %330 }
 0x101   : > { %v523_v41 = vadd.f32 %v522_v57, %v459_v26  ;;  %v398_v28 = vsub.f32 %v1192_v27, %v329_v54  ;;  %v399_v63 = vsub.f32 %v1193_v56, %v331_v55 }
 0x103   : > { %v524_v17 = vadd.f32 %v523_v41, %v460_v0  ;;  %v462_v18 = vand.u32 2147483647, %v398_v28  ;;  %v463_v10 = vand.u32 2147483647, %v399_v63 }
 0x104   : > { %v333_v43 = vpop.permute.xlu0 %332  ;;  %v335_v44 = vpop.permute.xlu1 %334 }
 0x105   : > { %v525_v9 = vadd.f32 %v524_v17, %v461_v42  ;;  %v400_v30 = vsub.f32 %v1194_v29, %v333_v43  ;;  %v401_v61 = vsub.f32 %v1195_v58, %v335_v44 }
 0x107   : > { %v526_v53 = vadd.f32 %v525_v9, %v462_v18  ;;  %v464_v45 = vand.u32 2147483647, %v400_v30  ;;  %v465_v20 = vand.u32 2147483647, %v401_v61 }
 0x108   : > { %v337_v60 = vpop.permute.xlu0 %336  ;;  %v339_v46 = vpop.permute.xlu1 %338 }
 0x109   : > { %v527_v19 = vadd.f32 %v526_v53, %v463_v10  ;;  %v402_v32 = vsub.f32 %v1196_v31, %v337_v60  ;;  %v403_v59 = vsub.f32 %v1197_v5, %v339_v46 }
 0x10b   : > { %v528_v11 = vadd.f32 %v527_v19, %v464_v45  ;;  %v466_v47 = vand.u32 2147483647, %v402_v32  ;;  %v467_v48 = vand.u32 2147483647, %v403_v59 }
 0x10d   : > { %v529_v12 = vadd.f32 %v528_v11, %v465_v20 }
 0x10f   : > { %v530_v49 = vadd.f32 %v529_v12, %v466_v47 }
 0x111   : > { %v531_v33 = vadd.f32 %v530_v49, %v467_v48 }
 0x113   : > { %v532_v34 = vadd.f32 %v531_v33, %v468_v1 }
 0x115   : > { %533 = vst [vmem:[%s739_s20] sm:$0xff] %v532_v34 }
 0x116 PF: > { %s11_s10 = sadd.s32 1, %s692_s10   ;;  %s1198_s6 = smov %s684_s8 }
 0x117   : > { %p8_p8 = scmp.ge.s32.totalorder %s11_s10, 6   ;;  %s1199_s7 = smov %s688_s9 }
 0x118   : > { %s1200_s8 = smov %s1203_s11  ;;  %s1201_s9 = smov %s1207_s12 }
 0x119   :  { %10 = sbr.rel (!%p8_p8) target bundleno = 3 (0x3), region = 58 }

</bundles_post_ra>
